<compile_context>
chip_gen: v5e
topology: v5e:2x2
jax: 0.10.0
libtpu: 0.0.40
codegen_flags: <defaults>
</compile_context>

<pallas_src>
import math

import jax
import jax.numpy as jnp
from jax import lax
from jax.experimental import pallas as pl
from jax.experimental.pallas import tpu as pltpu

_LANES = 128
_CHUNK_ROWS = 256   # rows folded per inner (fully unrolled) step


def _cdiv(a, b):
    return -(-a // b)


def _round_up(a, b):
    return _cdiv(a, b) * b


def _chip_generation():
    try:
        kind = jax.devices()[0].device_kind.lower()
    except Exception:
        return 0
    for gen in (7, 6, 5, 4, 3, 2):
        if ("v%d" % gen) in kind or ("tpu%d" % gen) in kind:
            return gen
    return 0


def bce_with_logits_loss(logits, targets, *, size_average=True, reduce=True,
                         row_tile=2048, num_splits=None, use_bf16_softplus=None,
                         cast_targets_to_bf16=False):
    """Pallas forward of torch.nn.BCEWithLogitsLoss (weight=None)."""
    assert logits.shape == targets.shape
    assert reduce, "only the reduce=True path is implemented in-kernel"
    # TODO(synk): reduce=False (per-element loss tensor) and the optional per-batch
    # `weight` rescaling are not wired in; the module default is weight=None.

    total = math.prod(logits.shape)
    assert 0 < total < 2 ** 31

    gen = _chip_generation()
    if use_bf16_softplus is None:
        # v6e/v7x have a bf16 EUP path (~2x exp/log throughput); v5e and older do not.
        use_bf16_softplus = gen >= 6
    if num_splits is None:
        # 2-way row split only where a second TensorCore could pick it up (v7x).
        # TODO(synk): verify in xprof that "parallel" engages both v7x TCs; if not,
        # switch grid axis 0 to pltpu.CORE_PARALLEL.
        num_splits = 2 if gen >= 7 else 1
    num_splits = max(1, int(num_splits))

    if cast_targets_to_bf16 and targets.dtype != jnp.bfloat16:
        # Only pays off if the cast fuses upstream; exact for {0,1} targets.
        targets = targets.astype(jnp.bfloat16)

    x = jnp.ravel(logits)
    t = jnp.ravel(targets)

    rows = _cdiv(total, _LANES)
    pad = rows * _LANES - total
    if pad:
        # Minimal pad to the next lane multiple (< 128 elements).  All remaining
        # raggedness is masked in-kernel, so no block-size padding copy is needed.
        x = jnp.concatenate([x, jnp.zeros((pad,), x.dtype)])
        t = jnp.concatenate([t, jnp.zeros((pad,), t.dtype)])
    x = x.reshape(rows, _LANES)
    t = t.reshape(rows, _LANES)

    num_splits = min(num_splits, max(1, rows // 8))

    rows_per_split = _cdiv(rows, num_splits)
    if rows_per_split <= _CHUNK_ROWS:
        row_tile_eff = _round_up(rows_per_split, 8)
        chunk_rows = row_tile_eff
    else:
        chunk_rows = _CHUNK_ROWS
        row_tile_eff = min(_round_up(row_tile, chunk_rows),
                           _round_up(rows_per_split, chunk_rows))
    nchunks = row_tile_eff // chunk_rows
    grid_inner = _cdiv(rows_per_split, row_tile_eff)
    num_blocks = _cdiv(rows, row_tile_eff)            # real data blocks
    # num_splits * grid_inner >= num_blocks always holds (coverage >= rows).

    full_rows = total // _LANES
    rem = total % _LANES
    needs_mask = (num_splits * grid_inner * row_tile_eff * _LANES) != total

    if num_splits * grid_inner == num_blocks:
        def in_index_map(c, i):
            return (c * grid_inner + i, 0)
    else:
        last_block = num_blocks - 1

        def in_index_map(c, i):
            # Overhanging virtual blocks re-read the last real block; their rows are
            # fully masked in the kernel (mask uses the *virtual* row index) so they
            # contribute exactly zero.
            return (jnp.minimum(c * grid_inner + i, last_block), 0)

    def kernel(x_ref, t_ref, out_ref):
        c = pl.program_id(0)
        i = pl.program_id(1)

        @pl.when(i == 0)
        def _():
            out_ref[...] = jnp.zeros_like(out_ref)

        # Virtual (unclamped) global row index of this tile's first row.
        base_row = (c * grid_inner + i) * row_tile_eff

        acc = jnp.zeros((8, _LANES), jnp.float32)
        for j in range(nchunks):                      # static offsets, fully unrolled
            off = j * chunk_rows
            xs = x_ref[pl.ds(off, chunk_rows), :].astype(jnp.float32)
            ts = t_ref[pl.ds(off, chunk_rows), :].astype(jnp.float32)

            # Stable BCE-with-logits: max(x,0) - x*t + log(1 + exp(-|x|))
            # -> exactly one exp + one log per element on the EUP.
            neg_abs = -jnp.abs(xs)
            if use_bf16_softplus:
                sp = jnp.log(1.0 + jnp.exp(neg_abs.astype(jnp.bfloat16)))
                sp = sp.astype(jnp.float32)
            else:
                sp = jnp.log(1.0 + jnp.exp(neg_abs))
            loss = jnp.maximum(xs, 0.0) - xs * ts + sp

            if needs_mask:
                grow = base_row + off + lax.broadcasted_iota(
                    jnp.int32, (chunk_rows, _LANES), 0)
                lane = lax.broadcasted_iota(jnp.int32, (chunk_rows, _LANES), 1)
                valid = (grow < full_rows) | ((grow == full_rows) & (lane < rem))
                loss = jnp.where(valid, loss, 0.0)

            # Sublane fold into an (8, 128) partial: pure vreg adds (VPU only).
            acc = acc + loss.reshape(-1, 8, _LANES).sum(axis=0)

        out_ref[...] += acc

    in_bytes = (jnp.dtype(x.dtype).itemsize + jnp.dtype(t.dtype).itemsize) * total
    cost = pl.CostEstimate(
        flops=6 * total,
        transcendentals=2 * total,
        bytes_accessed=in_bytes + num_splits * 8 * _LANES * 4,
    )

    partials = pl.pallas_call(
        kernel,
        out_shape=jax.ShapeDtypeStruct((num_splits * 8, _LANES), jnp.float32),
        grid_spec=pltpu.PrefetchScalarGridSpec(
            num_scalar_prefetch=0,
            grid=(num_splits, grid_inner),
            in_specs=[
                pl.BlockSpec((row_tile_eff, _LANES), in_index_map),
                pl.BlockSpec((row_tile_eff, _LANES), in_index_map),
            ],
            out_specs=pl.BlockSpec((8, _LANES), lambda c, i: (c, 0)),
        ),
        compiler_params=pltpu.CompilerParams(
            dimension_semantics=("parallel", "arbitrary"),
            vmem_limit_bytes=32 * 1024 * 1024,
        ),
        cost_estimate=cost,
    )(x, t)

    total_loss = jnp.sum(partials, dtype=jnp.float32)
    if size_average:
        total_loss = total_loss / jnp.float32(total)
    return total_loss


def _reference(logits, targets, size_average=True):
    # Literal PyTorch formula from the module spec.
    x = logits.astype(jnp.float32)
    t = targets.astype(jnp.float32)
    max_val = jnp.maximum(-x, 0.0)
    loss = x - x * t + max_val + jnp.log(jnp.exp(-max_val) + jnp.exp(-x - max_val))
    return jnp.mean(loss) if size_average else jnp.sum(loss)


if __name__ == "__main__":
    key = jax.random.PRNGKey(0)
    k1, k2, k3, k4, k5, k6 = jax.random.split(key, 6)

    bf16_path = _chip_generation() >= 6
    rtol = 2e-2 if bf16_path else 1e-4
    atol = 1e-2 if bf16_path else 1e-5

    # Test 1: mean reduction, lane-aligned shape -> zero-copy path, no masking.
    logits1 = jax.random.normal(k1, (16, 128), dtype=jnp.float32)
    targets1 = (jax.random.uniform(k2, (16, 128)) > 0.5).astype(jnp.float32)
    out1 = jax.block_until_ready(bce_with_logits_loss(logits1, targets1))
    ref1 = _reference(logits1, targets1, size_average=True)
    assert jnp.allclose(out1, ref1, rtol=rtol, atol=atol), (out1, ref1)

    # Test 2: sum reduction, ragged shape -> minimal lane pad + in-kernel masking;
    # f32 softplus branch forced so that path is always compiled/checked.
    logits2 = jax.random.normal(k3, (5, 37), dtype=jnp.float32)
    targets2 = (jax.random.uniform(k4, (5, 37)) > 0.5).astype(jnp.float32)
    out2 = jax.block_until_ready(
        bce_with_logits_loss(logits2, targets2, size_average=False,
                             use_bf16_softplus=False))
    ref2 = _reference(logits2, targets2, size_average=False)
    assert jnp.allclose(out2, ref2, rtol=1e-5, atol=1e-5), (out2, ref2)

    # Test 3: forces the 2-way split with a small tile -> multi-block grid, a clamped
    # overhang block, and a ragged last block (total % 128 != 0), soft targets.
    logits3 = jax.random.normal(k5, (300, 257), dtype=jnp.float32)
    targets3 = jax.random.uniform(k6, (300, 257), dtype=jnp.float32)
    out3 = jax.block_until_ready(
        bce_with_logits_loss(logits3, targets3, size_average=True,
                             row_tile=256, num_splits=2))
    ref3 = _reference(logits3, targets3, size_average=True)
    assert jnp.allclose(out3, ref3, rtol=rtol, atol=atol), (out3, ref3)

    print("KERNEL_OK")
</pallas_src>

<mosaic_0001>
module attributes {stable_mosaic.version = 11 : i64} {
  func.func @kernel(%arg0: i32, %arg1: i32, %arg2: memref<16x128xf32, #tpu.memory_space<vmem>>, %arg3: memref<16x128xf32, #tpu.memory_space<vmem>>, %arg4: memref<8x128xf32, #tpu.memory_space<vmem>>) attributes {dimension_semantics = [#tpu.dimension_semantics<parallel>, #tpu.dimension_semantics<arbitrary>], iteration_bounds = array<i64: 1, 1>, scalar_prefetch = 0 : i64, scratch_operands = 0 : i64, tpu.core_type = #tpu.core_type<tc>, window_params = [{transform_indices = @transform_0, window_bounds = array<i64: 16, 128>}, {transform_indices = @transform_1, window_bounds = array<i64: 16, 128>}, {transform_indices = @transform_2, window_bounds = array<i64: 8, 128>}]} {
    %c0_i32 = arith.constant 0 : i32
    %0 = arith.cmpi eq, %arg1, %c0_i32 : i32
    %1 = arith.extui %0 : i1 to i32
    %c0_i32_0 = arith.constant 0 : i32
    %2 = arith.cmpi ne, %1, %c0_i32_0 : i32
    scf.if %2 {
      %cst_12 = arith.constant 0.000000e+00 : f32
      %24 = vector.broadcast %cst_12 : f32 to vector<8x128xf32>
      %c0_13 = arith.constant 0 : index
      %c0_14 = arith.constant 0 : index
      %25 = vector.load %arg4[%c0_13, %c0_14] : memref<8x128xf32, #tpu.memory_space<vmem>>, vector<8x128xf32>
      tpu.vector_store %arg4[%c0_13, %c0_14], %24 {strides = array<i32>} : memref<8x128xf32, #tpu.memory_space<vmem>>, vector<8x128xf32>,
    } else {
    }
    %cst = arith.constant 0.000000e+00 : f32
    %3 = vector.broadcast %cst : f32 to vector<8x128xf32>
    %c0 = arith.constant 0 : index
    %c0_1 = arith.constant 0 : index
    %4 = vector.load %arg2[%c0, %c0_1] : memref<16x128xf32, #tpu.memory_space<vmem>>, vector<16x128xf32>
    %c0_2 = arith.constant 0 : index
    %c0_3 = arith.constant 0 : index
    %5 = vector.load %arg3[%c0_2, %c0_3] : memref<16x128xf32, #tpu.memory_space<vmem>>, vector<16x128xf32>
    %6 = math.absf %4 : vector<16x128xf32>
    %cst_4 = arith.constant 0.000000e+00 : f32
    %7 = vector.broadcast %cst_4 : f32 to vector<16x128xf32>
    %8 = arith.subf %7, %6 : vector<16x128xf32>
    %9 = math.exp %8 : vector<16x128xf32>
    %cst_5 = arith.constant 1.000000e+00 : f32
    %10 = vector.broadcast %cst_5 : f32 to vector<16x128xf32>
    %11 = arith.addf %10, %9 : vector<16x128xf32>
    %12 = math.log %11 : vector<16x128xf32>
    %cst_6 = arith.constant 0.000000e+00 : f32
    %13 = vector.broadcast %cst_6 : f32 to vector<16x128xf32>
    %14 = arith.maximumf %4, %13 : vector<16x128xf32>
    %15 = arith.mulf %4, %5 : vector<16x128xf32>
    %16 = arith.subf %14, %15 : vector<16x128xf32>
    %17 = arith.addf %16, %12 : vector<16x128xf32>
    %18 = vector.shape_cast %17 : vector<16x128xf32> to vector<2x8x128xf32>
    %cst_7 = arith.constant dense<0.000000e+00> : vector<8x128xf32>
    %19 = vector.multi_reduction <add>, %18, %cst_7 [0] : vector<2x8x128xf32> to vector<8x128xf32>
    %20 = arith.addf %3, %19 : vector<8x128xf32>
    %c0_8 = arith.constant 0 : index
    %c0_9 = arith.constant 0 : index
    %21 = vector.load %arg4[%c0_8, %c0_9] : memref<8x128xf32, #tpu.memory_space<vmem>>, vector<8x128xf32>
    %22 = arith.addf %21, %20 : vector<8x128xf32>
    %c0_10 = arith.constant 0 : index
    %c0_11 = arith.constant 0 : index
    %23 = vector.load %arg4[%c0_10, %c0_11] : memref<8x128xf32, #tpu.memory_space<vmem>>, vector<8x128xf32>
    tpu.vector_store %arg4[%c0_10, %c0_11], %22 {strides = array<i32>} : memref<8x128xf32, #tpu.memory_space<vmem>>, vector<8x128xf32>,
    return
  }
  func.func @transform_0(%arg0: i32, %arg1: i32) -> (i32, i32) {
    %c1_i32 = arith.constant 1 : i32
    %0 = arith.muli %arg0, %c1_i32 : i32
    %1 = arith.addi %0, %arg1 : i32
    %c0_i32 = arith.constant 0 : i32
    %c0_i32_0 = arith.constant 0 : i32
    return %1, %c0_i32 : i32, i32
  }
  func.func @transform_1(%arg0: i32, %arg1: i32) -> (i32, i32) {
    %c1_i32 = arith.constant 1 : i32
    %0 = arith.muli %arg0, %c1_i32 : i32
    %1 = arith.addi %0, %arg1 : i32
    %c0_i32 = arith.constant 0 : i32
    %c0_i32_0 = arith.constant 0 : i32
    return %1, %c0_i32 : i32, i32
  }
  func.func @transform_2(%arg0: i32, %arg1: i32) -> (i32, i32) {
    %c0_i32 = arith.constant 0 : i32
    %c0_i32_0 = arith.constant 0 : i32
    return %arg0, %c0_i32 : i32, i32
  }
}

</mosaic_0001>

<bundles_post_ra>
// kernel: tpu_custom_call.1
= control target key start
LH: loop header
LB: loop body
LE: loop exit
PB: predicated region body
PF: predicated region fallthrough
CT: control target
= control target key end

     0   :  { %7 = vsyncpa [#allocation3], 0  ;;  %s231_s0 = inlined_call_operand.hbm [shape: f32[16,128], index: 0, kind: input, shape index: {}]   ;;  %s232_s1 = inlined_call_operand.hbm [shape: f32[16,128], index: 1, kind: input, shape index: {}]   ;;  %s233_s2 = inlined_call_operand.hbm [shape: f32[8,128], index: 2, kind: output, shape index: {}]  }
   0x1   :  { %8 = vsyncpa [#allocation6], 0 }
   0x2   :  { %9 = vsyncpa [#allocation4], 0  ;;  %s18_s11 = sshll.u32 %s231_s0, 4  ;;  %s202_s12 = smov [#allocation2]   ;;  %s19_s11 = int_to_ptr.hbm [resolvable:$true] %s18_s11 }
   0x3   :  { %s20_s13 = sshll.u32 %s202_s12, 4  ;;  %s35_s16 = sshll.u32 %s232_s1, 4  ;;  %s21_s13 = int_to_ptr.vmem [resolvable:$true] %s20_s13  ;;  %s36_s16 = int_to_ptr.hbm [resolvable:$true] %s35_s16 }
   0x4   :  { %s203_s17 = smov 128   ;;  %s204_s18 = smov 8  }
   0x5   :  { %26 = dma.hbm_to_vmem [thread:$0]  %s19_s11, 256, %s21_s13, [#allocation3], %s203_s17, %s203_s17, %s204_s18  }
   0x6   :  { %s205_s19 = smov [#allocation5]  }
   0x7   :  { %s37_s20 = sshll.u32 %s205_s19, 4  ;;  %s38_s20 = int_to_ptr.vmem [resolvable:$true] %s37_s20 }
   0x8   :  { %43 = dma.hbm_to_vmem [thread:$0]  %s36_s16, 256, %s38_s20, [#allocation6], %s203_s17, %s203_s17, %s204_s18  }
   0x9   :  { %196 = dma.done.wait [#allocation3], 256  }
   0xa   :  { %197 = vsyncadd [#allocation3], 4294967040 }
   0xb   :  { %198 = dma.done.wait [#allocation6], 256  }
   0xc   :  { %199 = vsyncadd [#allocation6], 4294967040  ;;  %v61_v0 = vld [vmem:[#allocation2] sm:$0xff]  ;;  %v62_v1 = vld [vmem:[#allocation2 + $0x8] sm:$0xff]  ;;  %s206_s0 = smov [#allocation7]   ;;  %s99_s23 = sshll.u32 %s233_s2, 4  ;;  %s100_s23 = int_to_ptr.hbm [resolvable:$true] %s99_s23 }
   0xd   :  { %v65_v2 = vand.u32 2147483647, %v61_v0  ;;  %v66_v3 = vand.u32 2147483647, %v62_v1  ;;  %v63_v10 = vld [vmem:[#allocation5] sm:$0xff]  ;;  %v64_v12 = vld [vmem:[#allocation5 + $0x8] sm:$0xff] }
   0xe   :  { %v79_v14 = vmax.f32 %v61_v0, 0.0  ;;  %v81_v15 = vmul.f32 %v63_v10, %v61_v0  ;;  %v80_v16 = vmax.f32 %v62_v1, 0.0  ;;  %v82_v17 = vmul.f32 %v64_v12, %v62_v1  ;;  %s97_s1 = sshll.u32 %s206_s0, 4  ;;  %s98_s1 = int_to_ptr.vmem [resolvable:$true] %s97_s1 }
   0xf   :  { %v67_v4 = vsub.f32 0.0, %v65_v2  ;;  %v68_v5 = vsub.f32 0.0, %v66_v3 }
  0x10   :  { %v83_v18 = vsub.f32 %v79_v14, %v81_v15  ;;  %v84_v20 = vsub.f32 %v80_v16, %v82_v17 }
  0x11   :  { %v69_v6 = vmul.f32 1.442695, %v67_v4  ;;  %v71_v7 = vmul.f32 1.442695, %v68_v5 }
  0x13   :  { %116 = vpow2.f32 %v69_v6 }
  0x14   :  { %118 = vpow2.f32 %v71_v7 }
  0x19   :  { %v117_v8 = vpop.eup %116 }
  0x1a   :  { %v119_v9 = vpop.eup %118  ;;  %v73_v11 = vadd.f32 1.0, %v117_v8 }
  0x1b   :  { %v74_v13 = vadd.f32 1.0, %v119_v9 }
  0x1c   :  { %120 = vlog2.f32 %v73_v11 }
  0x1d   :  { %122 = vlog2.f32 %v74_v13 }
  0x22   :  { %v121_v19 = vpop.eup %120 }
  0x23   :  { %v123_v21 = vpop.eup %122  ;;  %v76_v22 = vmul.f32 0.6931472, %v121_v19 }
  0x24   :  { %v78_v23 = vmul.f32 0.6931472, %v123_v21 }
  0x25   :  { %v85_v24 = vadd.f32 %v83_v18, %v76_v22 }
  0x26   :  { %v86_v25 = vadd.f32 %v84_v20, %v78_v23 }
  0x28   :  { %v87_v26 = vadd.f32 %v86_v25, %v85_v24 }
  0x2a   :  { %91 = vst [vmem:[#allocation7] sm:$0xff] %v87_v26 }
  0x2b   :  { %102 = dma.vmem_to_hbm [thread:$0]  %s98_s1, 128, %s100_s23, [#allocation4]  }
  0x2c   :  { %200 = dma.done.wait [#allocation4], 128  }
  0x2d   :  { %201 = vsyncadd [#allocation4], 4294967168 }
  0x2e   :  { %107 = vsyncpa [#allocation3], 1 }
  0x2f   :  { %108 = vsyncpa [#allocation6], 1 }
  0x30   :  { %109 = vsyncpa [#allocation4], 1 }

</bundles_post_ra>
